<compile_context>
chip_gen: v7x
topology: tpu7x:2x2x1
jax: 0.10.0
libtpu: 0.0.40
codegen_flags: <defaults>
</compile_context>

<pallas_src>
import functools

import jax
import jax.numpy as jnp
from jax.experimental import pallas as pl
from jax.experimental.pallas import tpu as pltpu

_SUBLANE = 8
_LANE = 128


def _fc_kernel(x_ref, w1_ref, b1_ref, w2_ref, b2_ref, w3_ref, b3_ref,
               x1_ref, x2_ref, x3_ref):
    """Three chained Linear(+ReLU) layers fused per batch tile (MXU + VPU)."""
    x0 = x_ref[...]

    x1 = jnp.maximum(
        jnp.dot(x0, w1_ref[...], preferred_element_type=jnp.float32) + b1_ref[...],
        0.0)
    x1_ref[...] = x1.astype(x1_ref.dtype)

    x2 = jnp.maximum(
        jnp.dot(x1, w2_ref[...], preferred_element_type=jnp.float32) + b2_ref[...],
        0.0)
    x2_ref[...] = x2.astype(x2_ref.dtype)

    x3 = jnp.dot(x2, w3_ref[...], preferred_element_type=jnp.float32) + b3_ref[...]
    x3_ref[...] = x3.astype(x3_ref.dtype)


def _round_up(v, m):
    return ((v + m - 1) // m) * m


def _pick_batch_tile(batch, block_b):
    """Batch-tile rows.

    Small batches: one tile covering the whole batch (block dim == full array
    dim is legal for any B, needs no padding).  Larger batches: a sublane-
    aligned tile giving ~8 grid steps (>=2 so v7x's two TensorCores and the
    prefetch pipeline stay busy), floored at 256 rows to amortize per-step
    overhead and capped at block_b.
    """
    b8 = _round_up(batch, _SUBLANE)
    if b8 <= 256:
        return batch
    bb = _round_up(pl.cdiv(b8, 8), _SUBLANE)   # aim for ~8 grid steps
    bb = max(256, bb)
    return min(bb, block_b, b8)


@functools.partial(jax.jit, static_argnames=("block_b",))
def fc_forward(x, w1, b1, w2, b2, w3, b3, *, block_b=1024):
    """x: (B, 1, 28, 28) float32. Returns (x1, x2, x3) matching the torch module."""
    B = x.shape[0]
    x_flat = x.reshape(B, -1)                    # (B, 784), free for contiguous NCHW
    if x_flat.dtype != jnp.float32:
        x_flat = x_flat.astype(jnp.float32)
    d_in = x_flat.shape[1]                       # 784
    h = w1.shape[0]                              # 100
    d_out = w3.shape[0]                          # 10

    bb = _pick_batch_tile(B, block_b)
    grid = (pl.cdiv(B, bb),)                     # ragged last tile: Pallas masks stores

    # PyTorch stores Linear weights as (out, in); pre-transpose once (~350 KB
    # total, negligible vs activation traffic).  Feature dims stay UNPADDED:
    # no extra HBM bytes, no post-kernel slicing.  Not padding the hidden dim
    # to the MXU width is deliberate — the kernel is HBM-bound, padding only
    # adds traffic.
    w1t = w1.T                                   # (784, 100)
    w2t = w2.T                                   # (100, 100)
    w3t = w3.T                                   # (100, 10)
    b1r = b1.reshape(1, h)
    b2r = b2.reshape(1, h)
    b3r = b3.reshape(1, d_out)

    # VMEM budget from the actual per-step working set (double-buffered x and
    # outputs + resident weights, using in-VMEM lane/sublane-padded footprints),
    # x1.5 headroom; 16 MiB floor covers compiler-internal scratch, 64 MiB cap
    # keeps it safe on v7x's 64 MiB VMEM.  (Weights with a constant index_map
    # are still double-buffered by default; that ~0.5 MB is accounted for here
    # rather than forcing single-buffering.)
    f32 = 4
    d_in_p = _round_up(d_in, _LANE)
    h_p = _round_up(h, _LANE)
    o_p = _round_up(d_out, _LANE)
    h_s = _round_up(h, _SUBLANE)
    working = f32 * (
        2 * bb * d_in_p                                   # streamed x
        + 2 * bb * (h_p + h_p + o_p)                      # streamed outputs
        + 2 * (d_in * h_p + h_s * h_p + h_s * o_p)        # resident weights (2 bufs)
        + 2 * 3 * _SUBLANE * _LANE                        # biases
        + 4 * bb * h_p)                                   # compute temporaries
    vmem_limit = int(min(64 << 20, max(16 << 20, working * 3 // 2)))

    in_specs = [
        pl.BlockSpec((bb, d_in), lambda i: (i, 0)),       # x tile (streamed)
        pl.BlockSpec((d_in, h),  lambda i: (0, 0)),       # W1^T (resident)
        pl.BlockSpec((1, h),     lambda i: (0, 0)),       # b1
        pl.BlockSpec((h, h),     lambda i: (0, 0)),       # W2^T
        pl.BlockSpec((1, h),     lambda i: (0, 0)),       # b2
        pl.BlockSpec((h, d_out), lambda i: (0, 0)),       # W3^T
        pl.BlockSpec((1, d_out), lambda i: (0, 0)),       # b3
    ]
    out_specs = [
        pl.BlockSpec((bb, h),     lambda i: (i, 0)),      # x1 (unpadded)
        pl.BlockSpec((bb, h),     lambda i: (i, 0)),      # x2 (unpadded)
        pl.BlockSpec((bb, d_out), lambda i: (i, 0)),      # x3 (unpadded)
    ]
    out_shape = [
        jax.ShapeDtypeStruct((B, h), jnp.float32),
        jax.ShapeDtypeStruct((B, h), jnp.float32),
        jax.ShapeDtypeStruct((B, d_out), jnp.float32),
    ]

    x1, x2, x3 = pl.pallas_call(
        _fc_kernel,
        grid_spec=pltpu.PrefetchScalarGridSpec(
            num_scalar_prefetch=0,
            grid=grid,
            in_specs=in_specs,
            out_specs=out_specs,
        ),
        out_shape=out_shape,
        compiler_params=pltpu.CompilerParams(
            dimension_semantics=("parallel",),
            vmem_limit_bytes=vmem_limit,
        ),
    )(x_flat, w1t, b1r, w2t, b2r, w3t, b3r)
    return x1, x2, x3


def _init_linear(key, out_features, in_features):
    """PyTorch nn.Linear default init: U(-1/sqrt(in), 1/sqrt(in))."""
    kw, kb = jax.random.split(key)
    bound = 1.0 / (in_features ** 0.5)
    w = jax.random.uniform(kw, (out_features, in_features), jnp.float32,
                           minval=-bound, maxval=bound)
    b = jax.random.uniform(kb, (out_features,), jnp.float32,
                           minval=-bound, maxval=bound)
    return w, b


def _reference(x, w1, b1, w2, b2, w3, b3):
    hi = jax.lax.Precision.HIGHEST
    xf = x.reshape(x.shape[0], -1)
    r1 = jnp.maximum(jnp.dot(xf, w1.T, precision=hi) + b1, 0.0)
    r2 = jnp.maximum(jnp.dot(r1, w2.T, precision=hi) + b2, 0.0)
    r3 = jnp.dot(r2, w3.T, precision=hi) + b3
    return r1, r2, r3


if __name__ == "__main__":
    key = jax.random.PRNGKey(0)
    kx, k1, k2, k3 = jax.random.split(key, 4)

    w1, b1 = _init_linear(k1, 100, 28 * 28)
    w2, b2 = _init_linear(k2, 100, 100)
    w3, b3 = _init_linear(k3, 10, 100)

    # Small MNIST-shaped batch (single full-batch tile, no padding, no slicing).
    B = 8
    x = jax.random.normal(kx, (B, 1, 28, 28), jnp.float32)

    x1, x2, x3 = fc_forward(x, w1, b1, w2, b2, w3, b3)
    jax.block_until_ready((x1, x2, x3))

    r1, r2, r3 = _reference(x, w1, b1, w2, b2, w3, b3)
    assert x1.shape == (B, 100) and x2.shape == (B, 100) and x3.shape == (B, 10)
    assert jnp.allclose(x1, r1, atol=1e-4, rtol=1e-4)
    assert jnp.allclose(x2, r2, atol=1e-4, rtol=1e-4)
    assert jnp.allclose(x3, r3, atol=1e-4, rtol=1e-4)

    print("KERNEL_OK")
</pallas_src>

<mosaic_0001>
module attributes {stable_mosaic.version = 11 : i64} {
  func.func @_fc_kernel(%arg0: i32, %arg1: memref<8x784xf32, #tpu.memory_space<vmem>>, %arg2: memref<784x100xf32, #tpu.memory_space<vmem>>, %arg3: memref<1x100xf32, #tpu.memory_space<vmem>>, %arg4: memref<100x100xf32, #tpu.memory_space<vmem>>, %arg5: memref<1x100xf32, #tpu.memory_space<vmem>>, %arg6: memref<100x10xf32, #tpu.memory_space<vmem>>, %arg7: memref<1x10xf32, #tpu.memory_space<vmem>>, %arg8: memref<8x100xf32, #tpu.memory_space<vmem>>, %arg9: memref<8x100xf32, #tpu.memory_space<vmem>>, %arg10: memref<8x10xf32, #tpu.memory_space<vmem>>) attributes {dimension_semantics = [#tpu.dimension_semantics<parallel>], iteration_bounds = array<i64: 1>, scalar_prefetch = 0 : i64, scratch_operands = 0 : i64, tpu.core_type = #tpu.core_type<tc>, window_params = [{transform_indices = @transform_0, window_bounds = array<i64: 8, 784>}, {pipeline_mode = #tpu.pipeline_mode<synchronous>, transform_indices = @transform_1, window_bounds = array<i64: 784, 100>}, {pipeline_mode = #tpu.pipeline_mode<synchronous>, transform_indices = @transform_2, window_bounds = array<i64: 1, 100>}, {pipeline_mode = #tpu.pipeline_mode<synchronous>, transform_indices = @transform_3, window_bounds = array<i64: 100, 100>}, {pipeline_mode = #tpu.pipeline_mode<synchronous>, transform_indices = @transform_4, window_bounds = array<i64: 1, 100>}, {pipeline_mode = #tpu.pipeline_mode<synchronous>, transform_indices = @transform_5, window_bounds = array<i64: 100, 10>}, {pipeline_mode = #tpu.pipeline_mode<synchronous>, transform_indices = @transform_6, window_bounds = array<i64: 1, 10>}, {transform_indices = @transform_7, window_bounds = array<i64: 8, 100>}, {transform_indices = @transform_8, window_bounds = array<i64: 8, 100>}, {transform_indices = @transform_9, window_bounds = array<i64: 8, 10>}]} {
    %c0 = arith.constant 0 : index
    %c0_0 = arith.constant 0 : index
    %0 = vector.load %arg1[%c0, %c0_0] : memref<8x784xf32, #tpu.memory_space<vmem>>, vector<8x784xf32>
    %c0_1 = arith.constant 0 : index
    %c0_2 = arith.constant 0 : index
    %1 = vector.load %arg2[%c0_1, %c0_2] : memref<784x100xf32, #tpu.memory_space<vmem>>, vector<784x100xf32>
    %cst = arith.constant dense<0.000000e+00> : vector<8x100xf32>
    %2 = tpu.matmul %0, %1, %cst {dimension_numbers = #tpu.dot_dimension_numbers<[1], [0], [0], [1], [0, 0, 1, 1], [], []>} : vector<8x784xf32>, vector<784x100xf32>, vector<8x100xf32> -> vector<8x100xf32>
    %c0_3 = arith.constant 0 : index
    %c0_4 = arith.constant 0 : index
    %3 = vector.load %arg3[%c0_3, %c0_4] : memref<1x100xf32, #tpu.memory_space<vmem>>, vector<1x100xf32>
    %4 = vector.broadcast %3 : vector<1x100xf32> to vector<8x100xf32>
    %5 = arith.addf %2, %4 : vector<8x100xf32>
    %cst_5 = arith.constant 0.000000e+00 : f32
    %6 = vector.broadcast %cst_5 : f32 to vector<8x100xf32>
    %7 = arith.maximumf %5, %6 : vector<8x100xf32>
    %c0_6 = arith.constant 0 : index
    %c0_7 = arith.constant 0 : index
    %8 = vector.load %arg8[%c0_6, %c0_7] : memref<8x100xf32, #tpu.memory_space<vmem>>, vector<8x100xf32>
    tpu.vector_store %arg8[%c0_6, %c0_7], %7 {strides = array<i32>} : memref<8x100xf32, #tpu.memory_space<vmem>>, vector<8x100xf32>,
    %c0_8 = arith.constant 0 : index
    %c0_9 = arith.constant 0 : index
    %9 = vector.load %arg4[%c0_8, %c0_9] : memref<100x100xf32, #tpu.memory_space<vmem>>, vector<100x100xf32>
    %cst_10 = arith.constant dense<0.000000e+00> : vector<8x100xf32>
    %10 = tpu.matmul %7, %9, %cst_10 {dimension_numbers = #tpu.dot_dimension_numbers<[1], [0], [0], [1], [0, 0, 1, 1], [], []>} : vector<8x100xf32>, vector<100x100xf32>, vector<8x100xf32> -> vector<8x100xf32>
    %c0_11 = arith.constant 0 : index
    %c0_12 = arith.constant 0 : index
    %11 = vector.load %arg5[%c0_11, %c0_12] : memref<1x100xf32, #tpu.memory_space<vmem>>, vector<1x100xf32>
    %12 = vector.broadcast %11 : vector<1x100xf32> to vector<8x100xf32>
    %13 = arith.addf %10, %12 : vector<8x100xf32>
    %cst_13 = arith.constant 0.000000e+00 : f32
    %14 = vector.broadcast %cst_13 : f32 to vector<8x100xf32>
    %15 = arith.maximumf %13, %14 : vector<8x100xf32>
    %c0_14 = arith.constant 0 : index
    %c0_15 = arith.constant 0 : index
    %16 = vector.load %arg9[%c0_14, %c0_15] : memref<8x100xf32, #tpu.memory_space<vmem>>, vector<8x100xf32>
    tpu.vector_store %arg9[%c0_14, %c0_15], %15 {strides = array<i32>} : memref<8x100xf32, #tpu.memory_space<vmem>>, vector<8x100xf32>,
    %c0_16 = arith.constant 0 : index
    %c0_17 = arith.constant 0 : index
    %17 = vector.load %arg6[%c0_16, %c0_17] : memref<100x10xf32, #tpu.memory_space<vmem>>, vector<100x10xf32>
    %cst_18 = arith.constant dense<0.000000e+00> : vector<8x10xf32>
    %18 = tpu.matmul %15, %17, %cst_18 {dimension_numbers = #tpu.dot_dimension_numbers<[1], [0], [0], [1], [0, 0, 1, 1], [], []>} : vector<8x100xf32>, vector<100x10xf32>, vector<8x10xf32> -> vector<8x10xf32>
    %c0_19 = arith.constant 0 : index
    %c0_20 = arith.constant 0 : index
    %19 = vector.load %arg7[%c0_19, %c0_20] : memref<1x10xf32, #tpu.memory_space<vmem>>, vector<1x10xf32>
    %20 = vector.broadcast %19 : vector<1x10xf32> to vector<8x10xf32>
    %21 = arith.addf %18, %20 : vector<8x10xf32>
    %c0_21 = arith.constant 0 : index
    %c0_22 = arith.constant 0 : index
    %22 = vector.load %arg10[%c0_21, %c0_22] : memref<8x10xf32, #tpu.memory_space<vmem>>, vector<8x10xf32>
    tpu.vector_store %arg10[%c0_21, %c0_22], %21 {strides = array<i32>} : memref<8x10xf32, #tpu.memory_space<vmem>>, vector<8x10xf32>,
    return
  }
  func.func @transform_0(%arg0: i32) -> (i32, i32) {
    %c0_i32 = arith.constant 0 : i32
    %c0_i32_0 = arith.constant 0 : i32
    return %arg0, %c0_i32 : i32, i32
  }
  func.func @transform_1(%arg0: i32) -> (i32, i32) {
    %c0_i32 = arith.constant 0 : i32
    %c0_i32_0 = arith.constant 0 : i32
    %c0_i32_1 = arith.constant 0 : i32
    return %c0_i32, %c0_i32_0 : i32, i32
  }
  func.func @transform_2(%arg0: i32) -> (i32, i32) {
    %c0_i32 = arith.constant 0 : i32
    %c0_i32_0 = arith.constant 0 : i32
    %c0_i32_1 = arith.constant 0 : i32
    return %c0_i32, %c0_i32_0 : i32, i32
  }
  func.func @transform_3(%arg0: i32) -> (i32, i32) {
    %c0_i32 = arith.constant 0 : i32
    %c0_i32_0 = arith.constant 0 : i32
    %c0_i32_1 = arith.constant 0 : i32
    return %c0_i32, %c0_i32_0 : i32, i32
  }
  func.func @transform_4(%arg0: i32) -> (i32, i32) {
    %c0_i32 = arith.constant 0 : i32
    %c0_i32_0 = arith.constant 0 : i32
    %c0_i32_1 = arith.constant 0 : i32
    return %c0_i32, %c0_i32_0 : i32, i32
  }
  func.func @transform_5(%arg0: i32) -> (i32, i32) {
    %c0_i32 = arith.constant 0 : i32
    %c0_i32_0 = arith.constant 0 : i32
    %c0_i32_1 = arith.constant 0 : i32
    return %c0_i32, %c0_i32_0 : i32, i32
  }
  func.func @transform_6(%arg0: i32) -> (i32, i32) {
    %c0_i32 = arith.constant 0 : i32
    %c0_i32_0 = arith.constant 0 : i32
    %c0_i32_1 = arith.constant 0 : i32
    return %c0_i32, %c0_i32_0 : i32, i32
  }
  func.func @transform_7(%arg0: i32) -> (i32, i32) {
    %c0_i32 = arith.constant 0 : i32
    %c0_i32_0 = arith.constant 0 : i32
    return %arg0, %c0_i32 : i32, i32
  }
  func.func @transform_8(%arg0: i32) -> (i32, i32) {
    %c0_i32 = arith.constant 0 : i32
    %c0_i32_0 = arith.constant 0 : i32
    return %arg0, %c0_i32 : i32, i32
  }
  func.func @transform_9(%arg0: i32) -> (i32, i32) {
    %c0_i32 = arith.constant 0 : i32
    %c0_i32_0 = arith.constant 0 : i32
    return %arg0, %c0_i32 : i32, i32
  }
}

</mosaic_0001>

<bundles_post_ra>
// kernel: fc_forward.1
= control target key start
LH: loop header
LB: loop body
LE: loop exit
PB: predicated region body
PF: predicated region fallthrough
CT: control target
= control target key end

     0   :  { %15 = vsyncpa [#allocation3], 0  ;;  %s1609_s0 = inlined_call_operand.vmem [shape: f32[8,784], index: 0, kind: input, shape index: {}]   ;;  %s1610_s1 = inlined_call_operand.vmem [shape: f32[784,100], index: 1, kind: input, shape index: {}]   ;;  %s1611_s2 = inlined_call_operand.vmem [shape: f32[1,100], index: 2, kind: input, shape index: {}]   ;;  %s1612_s3 = inlined_call_operand.vmem [shape: f32[100,100], index: 3, kind: input, shape index: {}]   ;;  %s1613_s4 = inlined_call_operand.vmem [shape: f32[1,100], index: 4, kind: input, shape index: {}]   ;;  %s1614_s5 = inlined_call_operand.vmem [shape: f32[100,10], index: 5, kind: input, shape index: {}]   ;;  %s1615_s6 = inlined_call_operand.vmem [shape: f32[1,10], index: 6, kind: input, shape index: {}]   ;;  %s1616_s7 = inlined_call_operand.hbm [shape: f32[8,100], index: 7, kind: output, shape index: {0}]   ;;  %s1617_s8 = inlined_call_operand.hbm [shape: f32[8,100], index: 8, kind: output, shape index: {1}]   ;;  %s1618_s9 = inlined_call_operand.hbm [shape: f32[8,10], index: 9, kind: output, shape index: {2}]  }
   0x1   :  { %v54_v0 = vld [vmem:[%s1610_s1 + $0x80] sm:$0xff]  ;;  %v55_v1 = vld [vmem:[%s1610_s1 + $0x88] sm:$0xff]  ;;  %v56_v11 = vld [vmem:[%s1610_s1 + $0x90] sm:$0xff] }
   0x2   :  { %v38_v2 = vld [vmem:[%s1610_s1] sm:$0xff]  ;;  %v877_v3 = vpack.c.bf16 %v55_v1, %v54_v0  ;;  %v39_v4 = vld [vmem:[%s1610_s1 + $0x8] sm:$0xff]  ;;  %v57_v13 = vld [vmem:[%s1610_s1 + $0x98] sm:$0xff] }
   0x3   :  { %v86_v5 = vld [vmem:[%s1610_s1 + $0x180] sm:$0xff]  ;;  %v87_v6 = vld [vmem:[%s1610_s1 + $0x188] sm:$0xff]  ;;  %v879_v7 = vpack.c.bf16 %v39_v4, %v38_v2  ;;  %v40_v14 = vld [vmem:[%s1610_s1 + $0x10] sm:$0xff]  ;;  %v881_v16 = vpack.c.bf16 %v57_v13, %v56_v11 }
   0x4   :  { %v909_v8 = vpack.c.bf16 %v87_v6, %v86_v5  ;;  %v70_v9 = vld [vmem:[%s1610_s1 + $0x100] sm:$0xff]  ;;  %v71_v10 = vld [vmem:[%s1610_s1 + $0x108] sm:$0xff]  ;;  %878 = vmatprep.subr.bf16.mxu0 %v877_v3  ;;  %v41_v15 = vld [vmem:[%s1610_s1 + $0x18] sm:$0xff] }
   0x5   :  { %v911_v12 = vpack.c.bf16 %v71_v10, %v70_v9  ;;  %880 = vmatpush3.bf16.msra.mxu0 %v879_v7  ;;  %v883_v17 = vpack.c.bf16 %v41_v15, %v40_v14  ;;  %v88_v18 = vld [vmem:[%s1610_s1 + $0x190] sm:$0xff]  ;;  %v89_v19 = vld [vmem:[%s1610_s1 + $0x198] sm:$0xff]  ;;  %v58_v23 = vld [vmem:[%s1610_s1 + $0xa0] sm:$0xff] }
   0x6   :  { %910 = vmatprep.subr.bf16.mxu1 %v909_v8  ;;  %v72_v20 = vld [vmem:[%s1610_s1 + $0x110] sm:$0xff]  ;;  %v913_v21 = vpack.c.bf16 %v89_v19, %v88_v18  ;;  %v73_v22 = vld [vmem:[%s1610_s1 + $0x118] sm:$0xff]  ;;  %v59_v24 = vld [vmem:[%s1610_s1 + $0xa8] sm:$0xff]  ;;  %882 = vmatprep.subr.bf16.mxu0 %v881_v16 }
   0x7   :  { %912 = vmatpush3.bf16.msra.mxu1 %v911_v12  ;;  %v915_v25 = vpack.c.bf16 %v73_v22, %v72_v20  ;;  %v885_v26 = vpack.c.bf16 %v59_v24, %v58_v23  ;;  %v42_v27 = vld [vmem:[%s1610_s1 + $0x20] sm:$0xff]  ;;  %v43_v28 = vld [vmem:[%s1610_s1 + $0x28] sm:$0xff]  ;;  %v60_v35 = vld [vmem:[%s1610_s1 + $0xb0] sm:$0xff] }
   0x8   :  { %v90_v29 = vld [vmem:[%s1610_s1 + $0x1a0] sm:$0xff]  ;;  %914 = vmatprep.subr.bf16.mxu1 %v913_v21  ;;  %v91_v30 = vld [vmem:[%s1610_s1 + $0x1a8] sm:$0xff]  ;;  %v887_v33 = vpack.c.bf16 %v43_v28, %v42_v27  ;;  %v61_v36 = vld [vmem:[%s1610_s1 + $0xb8] sm:$0xff] }
   0x9   :  { %v74_v31 = vld [vmem:[%s1610_s1 + $0x120] sm:$0xff]  ;;  %v75_v32 = vld [vmem:[%s1610_s1 + $0x128] sm:$0xff]  ;;  %884 = vmatpush3.bf16.msra.mxu0 %v883_v17  ;;  %v917_v34 = vpack.c.bf16 %v91_v30, %v90_v29  ;;  %v44_v37 = vld [vmem:[%s1610_s1 + $0x30] sm:$0xff]  ;;  %v889_v39 = vpack.c.bf16 %v61_v36, %v60_v35 }
   0xa   :  { %886 = vmatprep.subr.bf16.mxu0 %v885_v26  ;;  %v919_v38 = vpack.c.bf16 %v75_v32, %v74_v31  ;;  %v45_v40 = vld [vmem:[%s1610_s1 + $0x38] sm:$0xff]  ;;  %v92_v41 = vld [vmem:[%s1610_s1 + $0x1b0] sm:$0xff]  ;;  %v62_v46 = vld [vmem:[%s1610_s1 + $0xc0] sm:$0xff] }
   0xb   :  { %916 = vmatpush3.bf16.msra.mxu1 %v915_v25  ;;  %v93_v42 = vld [vmem:[%s1610_s1 + $0x1b8] sm:$0xff]  ;;  %v76_v44 = vld [vmem:[%s1610_s1 + $0x130] sm:$0xff]  ;;  %v63_v47 = vld [vmem:[%s1610_s1 + $0xc8] sm:$0xff]  ;;  %v891_v48 = vpack.c.bf16 %v45_v40, %v44_v37 }
   0xc   :  { %918 = vmatprep.subr.bf16.mxu1 %v917_v34  ;;  %v921_v43 = vpack.c.bf16 %v93_v42, %v92_v41  ;;  %v77_v45 = vld [vmem:[%s1610_s1 + $0x138] sm:$0xff]  ;;  %v94_v49 = vld [vmem:[%s1610_s1 + $0x1c0] sm:$0xff]  ;;  %v95_v50 = vld [vmem:[%s1610_s1 + $0x1c8] sm:$0xff]  ;;  %v893_v52 = vpack.c.bf16 %v63_v47, %v62_v46 }
   0xd   :  { %888 = vmatpush3.bf16.msra.mxu0 %v887_v33  ;;  %v923_v51 = vpack.c.bf16 %v77_v45, %v76_v44  ;;  %v46_v53 = vld [vmem:[%s1610_s1 + $0x40] sm:$0xff]  ;;  %v47_v54 = vld [vmem:[%s1610_s1 + $0x48] sm:$0xff]  ;;  %v925_v56 = vpack.c.bf16 %v95_v50, %v94_v49  ;;  %v64_v58 = vld [vmem:[%s1610_s1 + $0xd0] sm:$0xff]  ;;  %v1088_v50 = vmov 0.0|0.0  }
   0xe   :  { %890 = vmatprep.subr.bf16.mxu0 %v889_v39  ;;  %v78_v55 = vld [vmem:[%s1610_s1 + $0x140] sm:$0xff]  ;;  %v79_v57 = vld [vmem:[%s1610_s1 + $0x148] sm:$0xff]  ;;  %v65_v59 = vld [vmem:[%s1610_s1 + $0xd8] sm:$0xff]  ;;  %v895_v62 = vpack.c.bf16 %v47_v54, %v46_v53 }
   0xf   :  { %920 = vmatpush3.bf16.msra.mxu1 %v919_v38  ;;  %v96_v60 = vld [vmem:[%s1610_s1 + $0x1d0] sm:$0xff]  ;;  %v97_v61 = vld [vmem:[%s1610_s1 + $0x1d8] sm:$0xff]  ;;  %v927_v63 = vpack.c.bf16 %v79_v57, %v78_v55  ;;  %v897_v0 = vpack.c.bf16 %v65_v59, %v64_v58  ;;  %v66_v6 = vld [vmem:[%s1610_s1 + $0xe0] sm:$0xff] }
  0x10   :  { %922 = vmatprep.subr.bf16.mxu1 %v921_v43  ;;  %v48_v1 = vld [vmem:[%s1610_s1 + $0x50] sm:$0xff]  ;;  %v49_v2 = vld [vmem:[%s1610_s1 + $0x58] sm:$0xff]  ;;  %v929_v4 = vpack.c.bf16 %v97_v61, %v96_v60  ;;  %v67_v7 = vld [vmem:[%s1610_s1 + $0xe8] sm:$0xff] }
  0x11   :  { %892 = vmatpush3.bf16.msra.mxu0 %v891_v48  ;;  %v80_v3 = vld [vmem:[%s1610_s1 + $0x150] sm:$0xff]  ;;  %v81_v5 = vld [vmem:[%s1610_s1 + $0x158] sm:$0xff]  ;;  %v98_v8 = vld [vmem:[%s1610_s1 + $0x1e0] sm:$0xff]  ;;  %v899_v10 = vpack.c.bf16 %v49_v2, %v48_v1  ;;  %v901_v14 = vpack.c.bf16 %v67_v7, %v66_v6 }
  0x12   :  { %894 = vmatprep.subr.bf16.mxu0 %v893_v52  ;;  %v99_v9 = vld [vmem:[%s1610_s1 + $0x1e8] sm:$0xff]  ;;  %v50_v11 = vld [vmem:[%s1610_s1 + $0x60] sm:$0xff]  ;;  %v931_v13 = vpack.c.bf16 %v81_v5, %v80_v3  ;;  %v68_v19 = vld [vmem:[%s1610_s1 + $0xf0] sm:$0xff] }
  0x13   :  { %924 = vmatpush3.bf16.msra.mxu1 %v923_v51  ;;  %v32_v12 = vld [vmem:[%s1609_s0 + $0x8] sm:$0xff]  ;;  %v82_v16 = vld [vmem:[%s1610_s1 + $0x160] sm:$0xff]  ;;  %v933_v18 = vpack.c.bf16 %v99_v9, %v98_v8  ;;  %v69_v20 = vld [vmem:[%s1610_s1 + $0xf8] sm:$0xff] }
  0x14   :  { %926 = vmatprep.subr.bf16.mxu1 %v925_v56  ;;  %v51_v15 = vld [vmem:[%s1610_s1 + $0x68] sm:$0xff]  ;;  %211 = vmatprep.mubr.f32.mxu0 %v32_v12  ;;  %v34_v21 = vld [vmem:[%s1609_s0 + $0x18] sm:$0xff]  ;;  %v100_v22 = vld [vmem:[%s1610_s1 + $0x1f0] sm:$0xff]  ;;  %v905_v26 = vpack.c.bf16 %v69_v20, %v68_v19 }
  0x15   :  { %896 = vmatpush3.bf16.msra.mxu0 %v895_v62  ;;  %v83_v17 = vld [vmem:[%s1610_s1 + $0x168] sm:$0xff]  ;;  %v101_v23 = vld [vmem:[%s1610_s1 + $0x1f8] sm:$0xff]  ;;  %281 = vmatprep.mubr.f32.mxu1 %v34_v21  ;;  %v903_v24 = vpack.c.bf16 %v51_v15, %v50_v11  ;;  %v52_v27 = vld [vmem:[%s1610_s1 + $0x70] sm:$0xff] }
  0x16   :  { %898 = vmatprep.subr.bf16.mxu0 %v897_v0  ;;  %v935_v25 = vpack.c.bf16 %v83_v17, %v82_v16  ;;  %v53_v28 = vld [vmem:[%s1610_s1 + $0x78] sm:$0xff]  ;;  %v84_v29 = vld [vmem:[%s1610_s1 + $0x170] sm:$0xff]  ;;  %v937_v30 = vpack.c.bf16 %v101_v23, %v100_v22  ;;  %v118_v32 = vld [vmem:[%s1610_s1 + $0x280] sm:$0xff] }
  0x17   :  { %928 = vmatpush3.bf16.msra.mxu1 %v927_v63  ;;  %v85_v31 = vld [vmem:[%s1610_s1 + $0x178] sm:$0xff]  ;;  %v119_v33 = vld [vmem:[%s1610_s1 + $0x288] sm:$0xff]  ;;  %v907_v34 = vpack.c.bf16 %v53_v28, %v52_v27  ;;  %v102_v37 = vld [vmem:[%s1610_s1 + $0x200] sm:$0xff] }
  0x18   :  { %930 = vmatprep.subr.bf16.mxu1 %v929_v4  ;;  %v939_v35 = vpack.c.bf16 %v85_v31, %v84_v29  ;;  %v941_v36 = vpack.c.bf16 %v119_v33, %v118_v32  ;;  %v103_v38 = vld [vmem:[%s1610_s1 + $0x208] sm:$0xff]  ;;  %v120_v39 = vld [vmem:[%s1610_s1 + $0x290] sm:$0xff]  ;;  %v121_v40 = vld [vmem:[%s1610_s1 + $0x298] sm:$0xff] }
  0x19   :  { %900 = vmatpush3.bf16.msra.mxu0 %v899_v10  ;;  %v31_v41 = vld [vmem:[%s1609_s0] sm:$0xff]  ;;  %v943_v42 = vpack.c.bf16 %v103_v38, %v102_v37  ;;  %v33_v43 = vld [vmem:[%s1609_s0 + $0x10] sm:$0xff]  ;;  %v945_v44 = vpack.c.bf16 %v121_v40, %v120_v39  ;;  %v105_v46 = vld [vmem:[%s1610_s1 + $0x218] sm:$0xff] }
  0x1a   :  { %902 = vmatprep.subr.bf16.mxu0 %v901_v14  ;;  %v104_v45 = vld [vmem:[%s1610_s1 + $0x210] sm:$0xff]  ;;  %v122_v47 = vld [vmem:[%s1610_s1 + $0x2a0] sm:$0xff]  ;;  %v123_v48 = vld [vmem:[%s1610_s1 + $0x2a8] sm:$0xff] }
  0x1b   :  { %932 = vmatpush3.bf16.msra.mxu1 %v931_v13  ;;  %v36_v49 = vld [vmem:[%s1609_s0 + $0x28] sm:$0xff] }
  0x1c   :  { %934 = vmatprep.subr.bf16.mxu1 %v933_v18 }
  0x1d   :  { %904 = vmatpush3.bf16.msra.mxu0 %v903_v24 }
  0x1e   :  { %906 = vmatprep.subr.bf16.mxu0 %v905_v26 }
  0x1f   :  { %936 = vmatpush3.bf16.msra.mxu1 %v935_v25 }
  0x20   :  { %938 = vmatprep.subr.bf16.mxu1 %v937_v30 }
  0x21   :  { %908 = vmatpush3.bf16.msra.mxu0 %v907_v34 }
  0x22   :  { %942 = vmatprep.subr.bf16.mxu0 %v941_v36 }
  0x23   :  { %940 = vmatpush3.bf16.msra.mxu1 %v939_v35 }
  0x24   :  { %976 = vmatprep.subr.bf16.mxu1 %v1088_v50  ;;  %212 = vmatmul.mubr.f32.vlgmr.msra.gmra.mrb[0].mxu0 %v31_v41 }
  0x25   :  { %16 = vsyncpa [#allocation5], 0  ;;  %944 = vmatpush3.bf16.msra.mxu0 %v943_v42  ;;  %v947_v51 = vpack.c.bf16 %v105_v46, %v104_v45  ;;  %v949_v52 = vpack.c.bf16 %v123_v48, %v122_v47  ;;  %v106_v53 = vld [vmem:[%s1610_s1 + $0x220] sm:$0xff]  ;;  %v107_v54 = vld [vmem:[%s1610_s1 + $0x228] sm:$0xff]  ;;  %351 = vmatprep.mubr.f32.mxu0 %v36_v49  ;;  %vm1089_vm0 = vmmov 0   ;;  %v1090_v57 = vmov 0.0  }
  0x26   :  { %282 = vmatmul.mubr.f32.vlgmr.msra.gmra.mrb[0].mxu1 %v33_v43  ;;  %946 = vmatprep.subr.bf16.mxu0 %v945_v44  ;;  %v124_v55 = vld [vmem:[%s1610_s1 + $0x2b0] sm:$0xff]  ;;  %v125_v56 = vld [vmem:[%s1610_s1 + $0x2b8] sm:$0xff]  ;;  %v951_v58 = vpack.c.bf16 %v107_v54, %v106_v53  ;;  %v126_v62 = vld [vmem:[%s1610_s1 + $0x2c0] sm:$0xff]  ;;  %vm143_vm1 = vcmask 130048   ;;  %vm453_vm2 = vcmask 1043456   ;;  %vm428_vm3 = vcmask 818176  }
  0x27   :  { %845 = vmatprep.mubr.msk.f32.mxu1 %vm1089_vm0, %v1090_v57  ;;  %v953_v59 = vpack.c.bf16 %v125_v56, %v124_v55  ;;  %v108_v60 = vld [vmem:[%s1610_s1 + $0x230] sm:$0xff]  ;;  %v109_v61 = vld [vmem:[%s1610_s1 + $0x238] sm:$0xff]  ;;  %v127_v63 = vld [vmem:[%s1610_s1 + $0x2c8] sm:$0xff]  ;;  %s1091_s15 = smov [#allocation4]  }
  0x28   :  { %v955_v0 = vpack.c.bf16 %v109_v61, %v108_v60  ;;  %v957_v1 = vpack.c.bf16 %v127_v63, %v126_v62  ;;  %v110_v2 = vld [vmem:[%s1610_s1 + $0x240] sm:$0xff]  ;;  %v111_v3 = vld [vmem:[%s1610_s1 + $0x248] sm:$0xff]  ;;  %v128_v4 = vld [vmem:[%s1610_s1 + $0x2d0] sm:$0xff] }
  0x29   :  { %948 = vmatpush3.bf16.msra.mxu0 %v947_v51  ;;  %v129_v5 = vld [vmem:[%s1610_s1 + $0x2d8] sm:$0xff]  ;;  %v959_v6 = vpack.c.bf16 %v111_v3, %v110_v2  ;;  %v112_v8 = vld [vmem:[%s1610_s1 + $0x250] sm:$0xff]  ;;  %v130_v10 = vld [vmem:[%s1610_s1 + $0x2e0] sm:$0xff] }
  0x2a   :  { %950 = vmatprep.subr.bf16.mxu0 %v949_v52  ;;  %v961_v7 = vpack.c.bf16 %v129_v5, %v128_v4  ;;  %v113_v9 = vld [vmem:[%s1610_s1 + $0x258] sm:$0xff]  ;;  %v131_v11 = vld [vmem:[%s1610_s1 + $0x2e8] sm:$0xff]  ;;  %v114_v14 = vld [vmem:[%s1610_s1 + $0x260] sm:$0xff] }
  0x2b   :  { %v963_v12 = vpack.c.bf16 %v113_v9, %v112_v8  ;;  %v965_v13 = vpack.c.bf16 %v131_v11, %v130_v10  ;;  %v115_v15 = vld [vmem:[%s1610_s1 + $0x268] sm:$0xff]  ;;  %v132_v16 = vld [vmem:[%s1610_s1 + $0x2f0] sm:$0xff]  ;;  %v133_v17 = vld [vmem:[%s1610_s1 + $0x2f8] sm:$0xff] }
  0x2c   :  { %v967_v18 = vpack.c.bf16 %v115_v15, %v114_v14  ;;  %v969_v19 = vpack.c.bf16 %v133_v17, %v132_v16  ;;  %v116_v20 = vld [vmem:[%s1610_s1 + $0x270] sm:$0xff]  ;;  %v117_v21 = vld [vmem:[%s1610_s1 + $0x278] sm:$0xff]  ;;  %v134_v23 = vld [vmem:[%s1610_s1 + $0x300] sm:$0xff] }
  0x2d   :  { %952 = vmatpush3.bf16.msra.mxu0 %v951_v58  ;;  %v971_v22 = vpack.c.bf16 %v117_v21, %v116_v20  ;;  %v135_v24 = vld [vmem:[%s1610_s1 + $0x308] sm:$0xff]  ;;  %v35_v25 = vld [vmem:[%s1609_s0 + $0x20] sm:$0xff]  ;;  %v37_v27 = vld [vmem:[%s1609_s0 + $0x30] sm:$0xff]  ;;  %s1092_s0 = smov [#allocation2]  }
  0x2e   :  { %954 = vmatprep.subr.bf16.mxu0 %v953_v59  ;;  %v974_v26 = vpack.c.bf16 %v135_v24, %v134_v23  ;;  %v430_v28 = vld [vmem:[%s1612_s3] sm:$0xff]  ;;  %v431_v29 = vld [vmem:[%s1612_s3 + $0x8] sm:$0xff]  ;;  %v432_v30 = vld [vmem:[%s1612_s3 + $0x10] sm:$0xff]  ;;  %s633_s16 = sshll.u32 %s1092_s0, 4  ;;  %s634_s16 = int_to_ptr.vmem [resolvable:$true] %s633_s16 }
  0x2f   :  { %v977_v31 = vpack.c.bf16 %v431_v29, %v430_v28  ;;  %v433_v32 = vld [vmem:[%s1612_s3 + $0x18] sm:$0xff]  ;;  %v434_v34 = vld [vmem:[%s1612_s3 + $0x20] sm:$0xff]  ;;  %v435_v35 = vld [vmem:[%s1612_s3 + $0x28] sm:$0xff] }
  0x30   :  { %v980_v33 = vpack.c.bf16 %v433_v32, %v432_v30  ;;  %v983_v36 = vpack.c.bf16 %v435_v35, %v434_v34  ;;  %v436_v37 = vld [vmem:[%s1612_s3 + $0x30] sm:$0xff]  ;;  %v437_v38 = vld [vmem:[%s1612_s3 + $0x38] sm:$0xff]  ;;  %v438_v40 = vld [vmem:[%s1612_s3 + $0x40] sm:$0xff] }
  0x31   :  { %956 = vmatpush3.bf16.msra.mxu0 %v955_v0  ;;  %978 = vmatpush3.bf16.msra.mxu1 %v977_v31  ;;  %v986_v39 = vpack.c.bf16 %v437_v38, %v436_v37  ;;  %v439_v41 = vld [vmem:[%s1612_s3 + $0x48] sm:$0xff]  ;;  %v440_v43 = vld [vmem:[%s1612_s3 + $0x50] sm:$0xff]  ;;  %v441_v44 = vld [vmem:[%s1612_s3 + $0x58] sm:$0xff] }
  0x32   :  { %958 = vmatprep.subr.bf16.mxu0 %v957_v1  ;;  %979 = vmatprep.subr.bf16.mxu1 %v1088_v50  ;;  %v989_v42 = vpack.c.bf16 %v439_v41, %v438_v40  ;;  %v992_v45 = vpack.c.bf16 %v441_v44, %v440_v43  ;;  %v442_v46 = vld [vmem:[%s1612_s3 + $0x60] sm:$0xf]  ;;  %v530_v0 = vld [vmem:[%s1614_s5 + $0x8] sm:$0xff]  ;;  %v531_v5 = vld [vmem:[%s1614_s5 + $0x10] sm:$0xff] }
  0x33   :  { %v668_v48 = vld [vmem:[%s1611_s2] ss:$0 sm:$0xff]  ;;  %v534_v9 = vld [vmem:[%s1614_s5 + $0x28] sm:$0xff]  ;;  %v535_v11 = vld [vmem:[%s1614_s5 + $0x30] sm:$0xff]  ;;  %s643_s2 = sshll.u32 %s1091_s15, 4  ;;  %s644_s2 = int_to_ptr.vmem [resolvable:$true] %s643_s2 }
  0x34   :  { %v529_v63 = vld [vmem:[%s1614_s5] sm:$0xff]  ;;  %v538_v15 = vld [vmem:[%s1614_s5 + $0x48] sm:$0xff]  ;;  %v539_v17 = vld [vmem:[%s1614_s5 + $0x50] sm:$0xff]  ;;  %p1023_p1 = scmp.lt.s32.totalorder %s644_s2, %s644_s2 }
  0x35   :  { %960 = vmatpush3.bf16.msra.mxu0 %v959_v6  ;;  %981 = vmatpush3.bf16.msra.mxu1 %v980_v33  ;;  %v995_v3 = vpack.c.bf16 %v530_v0, %v529_v63  ;;  %v532_v6 = vld [vmem:[%s1614_s5 + $0x18] sm:$0xff]  ;;  %v533_v8 = vld [vmem:[%s1614_s5 + $0x20] sm:$0xff] }
  0x36   :  { %962 = vmatprep.subr.bf16.mxu0 %v961_v7  ;;  %982 = vmatprep.subr.bf16.mxu1 %v1088_v50  ;;  %v998_v7 = vpack.c.bf16 %v532_v6, %v531_v5  ;;  %v1001_v10 = vpack.c.bf16 %v534_v9, %v533_v8  ;;  %v537_v14 = vld [vmem:[%s1614_s5 + $0x40] sm:$0xff] }
  0x37   :  { %v1007_v16 = vpack.c.bf16 %v538_v15, %v537_v14  ;;  %v541_v20 = vld [vmem:[%s1614_s5 + $0x60] sm:$0xf] }
  0x39   :  { %964 = vmatpush3.bf16.msra.mxu0 %v963_v12  ;;  %984 = vmatpush3.bf16.msra.mxu1 %v983_v36  ;;  %v536_v12 = vld [vmem:[%s1614_s5 + $0x38] sm:$0xff] }
  0x3a   :  { %966 = vmatprep.subr.bf16.mxu0 %v965_v13  ;;  %985 = vmatprep.subr.bf16.mxu1 %v1088_v50  ;;  %v1004_v13 = vpack.c.bf16 %v536_v12, %v535_v11 }
  0x3d   :  { %968 = vmatpush3.bf16.msra.mxu0 %v967_v18  ;;  %987 = vmatpush3.bf16.msra.mxu1 %v986_v39  ;;  %v540_v18 = vld [vmem:[%s1614_s5 + $0x58] sm:$0xff]  ;;  %s1018_s5 = scalar_lea.vmem %s644_s2, 128 }
  0x3e   :  { %970 = vmatprep.subr.bf16.mxu0 %v969_v19  ;;  %988 = vmatprep.subr.bf16.mxu1 %v1088_v50  ;;  %v1010_v19 = vpack.c.bf16 %v540_v18, %v539_v17  ;;  %p1019_p0 = scmp.ne.s32.totalorder %s644_s2, %s1018_s5  ;;  %p1024_p2 = scmp.lt.s32.totalorder %s1018_s5, %s1018_s5 }
  0x40   :  { %p1025_p3 = por %p1024_p2, %p1023_p1 }
  0x41   :  { %972 = vmatpush3.bf16.msra.mxu0 %v971_v22  ;;  %990 = vmatpush3.bf16.msra.mxu1 %v989_v42 }
  0x42   :  { %973 = vmatprep.subr.bf16.mxu0 %v1088_v50  ;;  %991 = vmatprep.subr.bf16.mxu1 %v1088_v50  ;;  %p1026_p4 = pnand %p1025_p3, %p1019_p0 }
  0x44   :  { %352 = vmatmul.mubr.f32.vlgmr.msra.gmra.mrb[2].mxu0 %v35_v25 }
  0x45   :  { %975 = vmatpush3.bf16.msra.mxu0 %v974_v26  ;;  %816 = vmatprep.mubr.msk.f32.mxu0 %vm1089_vm0, %v1090_v57 }
  0x46   :  { %993 = vmatpush3.bf16.msra.mxu1 %v992_v45 }
  0x47   :  { %843 = vmatprep.subr.mxu1 %v1090_v57 }
  0x48   :  { %817 = vmatmul.mubr.msk.f32.vlgmr.msra.gmra.mrb[4].mxu0 %vm143_vm1, %v37_v27 }
  0x4a   :  { %844 = vmatpush3.msk.msra.mxu1 %vm453_vm2, %v442_v46 }
  0x4b   :  { %994 = vmatprep.subr.bf16.mxu1 %v1088_v50 }
  0xf7   :  { %v708_v47 = vpop.f32.mrb[0].mxu0 }
  0xf8   :  { %v709_v49 = vpop.f32.mrb[1].mxu0 }
  0xf9   :  { %v743_v51 = vpop.f32.mrb[0].mxu1  ;;  %v710_v52 = vadd.f32 %v709_v49, %v708_v47 }
  0xfa   :  { %v744_v53 = vpop.f32.mrb[1].mxu1 }
  0xfb   :  { %v745_v54 = vadd.f32 %v744_v53, %v743_v51  ;;  %v214_v55 = vadd.f32 %v710_v52, %v668_v48 }
  0xfd   :  { %v284_v56 = vadd.f32 %v745_v54, %v214_v55 }
 0x117   :  { %v778_v58 = vpop.f32.mrb[2].mxu0 }
 0x118   :  { %v779_v59 = vpop.f32.mrb[3].mxu0 }
 0x119   :  { %v780_v60 = vadd.f32 %v779_v59, %v778_v58 }
 0x11b   :  { %v354_v61 = vadd.f32 %v780_v60, %v284_v56  ;;  %v423_v62 = vpop.f32.mrb[4].mxu0 }
 0x11c   :  { %v818_v1 = vpop.f32.mrb[5].mxu0 }
 0x11d   :  { %v424_v2 = vadd.f32 %v423_v62, %v354_v61 }
 0x11f   :  { %v427_v4 = vmax.f32 %v424_v2, 0.0 }
 0x121   :  { %846 = vmatmul.mubr.msk.f32.vlgmr.msra.gmra.mrb[2].mxu1 %vm428_vm3, %v427_v4  ;;  %429 = vst.msk [vmem:[#allocation2] sm:$0xff] %vm428_vm3, %v427_v4 }
 0x122   :  { %996 = vmatpush3.bf16.msra.mxu1 %v995_v3  ;;  %874 = vmatprep.mubr.msk.f32.mxu1 %vm1089_vm0, %v1090_v57 }
 0x123   :  { %997 = vmatprep.subr.bf16.mxu1 %v1088_v50 }
 0x126   :  { %999 = vmatpush3.bf16.msra.mxu1 %v998_v7 }
 0x127   :  { %1000 = vmatprep.subr.bf16.mxu1 %v1088_v50 }
 0x12a   :  { %1002 = vmatpush3.bf16.msra.mxu1 %v1001_v10 }
 0x12b   :  { %1003 = vmatprep.subr.bf16.mxu1 %v1088_v50 }
 0x12e   :  { %1005 = vmatpush3.bf16.msra.mxu1 %v1004_v13 }
 0x12f   :  { %1006 = vmatprep.subr.bf16.mxu1 %v1088_v50 }
 0x132   :  { %1008 = vmatpush3.bf16.msra.mxu1 %v1007_v16 }
 0x133   :  { %1009 = vmatprep.subr.bf16.mxu1 %v1088_v50  ;;  %v670_v50 = vld [vmem:[%s1613_s4] ss:$0 sm:$0xff] }
 0x136   :  { %1011 = vmatpush3.bf16.msra.mxu1 %v1010_v19 }
 0x137   :  { %872 = vmatprep.subr.mxu1 %v1090_v57 }
 0x13a   :  { %873 = vmatpush3.msk.msra.mxu1 %vm453_vm2, %v541_v20 }
 0x1f4   :  { %v523_v21 = vpop.f32.mrb[2].mxu1 }
 0x1f5   :  { %v524_v22 = vadd.f32 %v670_v50, %v523_v21  ;;  %v847_v23 = vpop.f32.mrb[3].mxu1 }
 0x1f7   :  { %v527_v24 = vmax.f32 %v524_v22, 0.0 }
 0x1f9   :  { %528 = vst.msk [vmem:[#allocation4] sm:$0xff] %vm428_vm3, %v527_v24  ;;  %875 = vmatmul.mubr.msk.f32.vlgmr.msra.gmra.mrb[4].mxu1 %vm428_vm3, %v527_v24 }
 0x1fa   :  { %1029 = shalt.err (!%p1026_p4)
}
 0x1fb   :  { %s1030_s18 = scalar_lea.hbm %s1617_s8, 128 }
 0x1fc   :  { %p1031_p5 = scmp.ne.s32.totalorder %s1617_s8, %s1030_s18  ;;  %p1034_p6 = scmp.lt.u32.totalorder %s1030_s18, %s1617_s8 }
 0x1fe   :  { %p1036_p7 = pnand %p1034_p6, %p1031_p5 }
 0x200   :  { %1039 = shalt.err (!%p1036_p7)
}
 0x201   :  { %646 = dma.vmem_to_hbm [thread:$0]  %s644_s2, 128, %s1617_s8, [#allocation5]  }
 0x202   :  { %s1040_s25 = scalar_lea.vmem %s634_s16, 128  ;;  %p1045_p9 = scmp.lt.s32.totalorder %s634_s16, %s634_s16 }
 0x203   :  { %p1041_p8 = scmp.ne.s32.totalorder %s634_s16, %s1040_s25  ;;  %p1046_p10 = scmp.lt.s32.totalorder %s1040_s25, %s1040_s25 }
 0x205   :  { %p1047_p11 = por %p1046_p10, %p1045_p9 }
 0x207   :  { %p1048_p12 = pnand %p1047_p11, %p1041_p8 }
 0x209   :  { %1051 = shalt.err (!%p1048_p12)
}
 0x20a   :  { %s1052_s28 = scalar_lea.hbm %s1616_s7, 128 }
 0x20b   :  { %p1053_p13 = scmp.ne.s32.totalorder %s1616_s7, %s1052_s28  ;;  %p1056_p0 = scmp.lt.u32.totalorder %s1052_s28, %s1616_s7 }
 0x20d   :  { %p1058_p1 = pnand %p1056_p0, %p1053_p13 }
 0x20f   :  { %1061 = shalt.err (!%p1058_p1)
}
 0x210   :  { %636 = dma.vmem_to_hbm [thread:$0]  %s634_s16, 128, %s1616_s7, [#allocation3]   ;;  %v673_v57 = vld [vmem:[%s1615_s6] ss:$0 sm:$0xff]  ;;  %vm625_vm4 = vcmask 80896  }
 0x211   :  { %s1093_s13 = smov [#allocation6]  }
 0x212   :  { %s653_s14 = sshll.u32 %s1093_s13, 4  ;;  %s654_s14 = int_to_ptr.vmem [resolvable:$true] %s653_s14 }
 0x213   :  { %s1062_s15 = scalar_lea.vmem %s654_s14, 128  ;;  %p1067_p3 = scmp.lt.s32.totalorder %s654_s14, %s654_s14 }
 0x214   :  { %p1063_p2 = scmp.ne.s32.totalorder %s654_s14, %s1062_s15  ;;  %p1068_p4 = scmp.lt.s32.totalorder %s1062_s15, %s1062_s15 }
 0x216   :  { %p1069_p5 = por %p1068_p4, %p1067_p3 }
 0x218   :  { %p1070_p6 = pnand %p1069_p5, %p1063_p2 }
 0x2cc   :  { %v621_v25 = vpop.f32.mrb[4].mxu1 }
 0x2cd   :  { %v622_v26 = vadd.f32 %v673_v57, %v621_v25  ;;  %v876_v27 = vpop.f32.mrb[5].mxu1 }
 0x2cf   :  { %626 = vst.msk [vmem:[#allocation6] sm:$0xff] %vm625_vm4, %v622_v26 }
 0x2d0   :  { %1073 = shalt.err (!%p1070_p6)
}
 0x2d1   :  { %s1074_s0 = scalar_lea.hbm %s1618_s9, 128 }
 0x2d2   :  { %p1075_p7 = scmp.ne.s32.totalorder %s1618_s9, %s1074_s0  ;;  %p1078_p8 = scmp.lt.u32.totalorder %s1074_s0, %s1618_s9 }
 0x2d4   :  { %p1080_p9 = pnand %p1078_p8, %p1075_p7 }
 0x2d6   :  { %1083 = shalt.err (!%p1080_p9)
}
 0x2d7   :  { %656 = dma.vmem_to_hbm [thread:$0]  %s654_s14, 128, %s1618_s9, [#allocation5]  }
 0x2d8   :  { %1084 = dma.done.wait [#allocation3], 128  }
 0x2d9   :  { %1085 = vsyncadd [#allocation3], 4294967168 }
 0x2da   :  { %1086 = dma.done.wait [#allocation5], 256  }
 0x2db   :  { %1087 = vsyncadd [#allocation5], 4294967040 }
 0x2dc   :  { %666 = vsyncpa [#allocation3], 1 }
 0x2dd   :  { %667 = vsyncpa [#allocation5], 1 }

</bundles_post_ra>
